<compile_context>
chip_gen: v7x
topology: tpu7x:2x2x1
jax: 0.10.0
libtpu: 0.0.40
codegen_flags: <defaults>
</compile_context>

<pallas_src>
import functools
import math

import jax
import jax.numpy as jnp
import numpy as np
from jax.experimental import pallas as pl
from jax.experimental.pallas import tpu as pltpu

LN_EPS = 1e-5  # nn.LayerNorm default eps


# ----------------------------------------------------------------------------
# In-kernel segment (LayerNorm) reduction over contiguous lane segments.
# ----------------------------------------------------------------------------
def _make_segment_summer(shape, seg):
    """Returns seg_sum(xs): per-lane sums over contiguous lane segments of length
    `seg`, broadcast back to every lane of the segment, for each array in xs.

    O(log seg) within-segment shifts (binary decomposition of seg); each shift is
    2 XLU rolls + 1 VPU select per array.  The in-segment mask comes from a single
    lane iota (pltpu.roll follows np.roll semantics: out[i] = in[(i - shift) % n]),
    so no seg_id rolls and no repeated integer divides in the hot loop."""
    n = shape[-1]
    axis = len(shape) - 1  # pltpu.roll requires a non-negative axis
    if seg == 1:
        return lambda xs: list(xs)

    lane = jax.lax.broadcasted_iota(jnp.int32, shape, dimension=axis)
    if seg & (seg - 1) == 0:
        lane_in_seg = lane & (seg - 1)      # power-of-two seg: cheap bitwise AND
    else:
        lane_in_seg = lane % seg            # computed once per block
    mask_cache = {}

    def shift_within_seg(vals, r):
        # out[i] = v[(i + r) mod seg, within i's segment],  0 < r < seg.
        if r not in mask_cache:
            mask_cache[r] = lane_in_seg < (seg - r)
        take_a = mask_cache[r]
        s_a = (n - r) % n    # global roll taking from lane i + r
        s_b = seg - r        # global roll taking from lane i + r - seg (wrap case)
        return [jnp.where(take_a,
                          pltpu.roll(v, shift=s_a, axis=axis),
                          pltpu.roll(v, shift=s_b, axis=axis)) for v in vals]

    def seg_sum(xs):
        # Build cyclic within-segment window sums of power-of-two length by
        # doubling; fold the set bits of `seg` into the accumulator.
        # Shifts per array = floor(log2 seg) + popcount(seg) - 1  (O(log seg)).
        acc, acc_len = None, 0
        win, w, rem = list(xs), 1, seg
        while True:
            if rem & 1:
                if acc is None:
                    acc = win
                else:
                    acc = [a + s for a, s in zip(acc, shift_within_seg(win, acc_len))]
                acc_len += w
            rem >>= 1
            if rem == 0:
                return acc
            win = [a + b for a, b in zip(win, shift_within_seg(win, w))]
            w *= 2

    return seg_sum


# ----------------------------------------------------------------------------
# Kernel body.
# ----------------------------------------------------------------------------
def _sgu_kernel(z1_ref, z2_ref, w_ref, b_ref, o_ref, *, seg, mxu_dtype):
    # z1_ref, z2_ref, o_ref: (S, n_blk) lane-dense;  w_ref: (S, S);  b_ref: (S, 1)
    z2 = z2_ref[...].astype(jnp.float32)
    seg_sum = _make_segment_summer(z2.shape, seg)

    # Two-pass LayerNorm over lane segments of length `seg` (= d_z // 2):
    #   mean = E[x], var = E[(x - mean)^2]   (identity affine, as in the module).
    inv = 1.0 / float(seg)
    (sum_x,) = seg_sum([z2])
    mean = sum_x * inv
    d = z2 - mean
    (sum_dd,) = seg_sum([d * d])
    var = sum_dd * inv
    z2n = d * jax.lax.rsqrt(var + LN_EPS)

    # Single sequence-mixing matmul over the leading S axis.  Both operands are
    # mxu_dtype (bf16 by default -> native single-pass MXU), accumulation is f32;
    # W is resident (and already mxu_dtype, cast once on the host).
    y = jnp.dot(w_ref[...], z2n.astype(mxu_dtype),
                preferred_element_type=jnp.float32)
    y = y + b_ref[...]                       # (S, 1) f32 bias, broadcast over lanes

    z1 = z1_ref[...]
    if z1.dtype == jnp.bfloat16 and o_ref.dtype == jnp.bfloat16:
        # bf16 gate path (bf16-capable VPU on v6e/v7x): no z1 upcast, cast y once.
        o_ref[...] = z1 * y.astype(jnp.bfloat16)
    else:
        o_ref[...] = (z1.astype(jnp.float32) * y).astype(o_ref.dtype)


# ----------------------------------------------------------------------------
# Tiling heuristics (generation-aware VMEM budget incl. in-kernel f32 temps).
# ----------------------------------------------------------------------------
def _tpu_defaults():
    """(vmem_budget_bytes, preferred_min_grid_steps) per TPU generation."""
    try:
        kind = jax.devices()[0].device_kind.lower()
    except Exception:
        kind = ""
    if ("v5" in kind) or ("v6" in kind) or ("trillium" in kind):
        # 128 MiB physical VMEM, most HBM-bound generations -> big lane blocks.
        return 48 << 20, 2
    # v7x (64 MiB VMEM / 2 TensorCores) and unknown/interpret backends:
    # conservative budget and >= 4 grid steps so each core still double-buffers.
    return 20 << 20, 4


def _estimate_vmem_bytes(n_blk, rows, in_itemsize, out_itemsize, w_bytes):
    # 2 input streams + 1 output stream, double-buffered by the pipeliner.
    pipeline = rows * n_blk * (2 * 2 * in_itemsize + 2 * out_itemsize)
    # Live in-kernel f32 temporaries (z2, mean, d, d*d, rolled copies, z2n, y):
    # ~8 block-sized f32 arrays is a generous upper bound.
    temps = rows * n_blk * 4 * 8
    resident = 2 * w_bytes + rows * 4 * 2 + 4096     # W + bias column (+ slack)
    return pipeline + temps + resident


def _choose_lane_block(n_lanes, seg, rows, in_itemsize, out_itemsize, w_bytes,
                       vmem_budget, min_steps_pref):
    """Largest lane block that (a) keeps LN segments intact, (b) is a multiple of
    128 lanes, (c) divides the half-width N, (d) fits the per-generation VMEM
    budget including in-kernel f32 temporaries, and (e) leaves at least
    `min_steps_pref` grid steps when possible."""
    base = math.lcm(seg, 128)
    if n_lanes % base != 0:
        # TODO(synk): pad the lane axis when lcm(d_z//2, 128) does not divide (d_z//2)*D*C.
        raise ValueError(
            f"(d_z//2)*D*C = {n_lanes} must be a multiple of lcm(d_z//2, 128) = {base}")
    cands = [m for m in range(base, n_lanes + 1, base) if n_lanes % m == 0]
    fits = [m for m in cands
            if _estimate_vmem_bytes(m, rows, in_itemsize, out_itemsize, w_bytes)
            <= vmem_budget] or [base]
    for min_steps in sorted({min_steps_pref, 2, 1}, reverse=True):
        ok = [m for m in fits if n_lanes // m >= min_steps]
        if ok:
            return max(ok)
    return max(fits)


# ----------------------------------------------------------------------------
# Host wrapper.
# ----------------------------------------------------------------------------
def spatial_gating_unit(z, weight, bias, mask=None, *, lane_block=None,
                        mxu_dtype=jnp.bfloat16):
    """Forward of SpacialGatingUnit_3D_C (default LayerNorm branch).

    z      : [S, d_z, D, C] with C == d_z // 2 (required by LayerNorm([d_z//2]))
    weight : [seq_len, seq_len]  (only the leading [S, S] slab is used)
    bias   : [seq_len]
    mask   : optional [1 or S, S, 1] boolean visibility mask (folded into W)
    mxu_dtype: operand dtype fed to the MXU (bf16 default; accumulation is always
               f32).  Pass jnp.float32 for bit-faithful f32 matmuls.
    """
    S, dz, D, C = z.shape
    assert dz % 2 == 0
    B2 = dz // 2
    assert C == B2, "LayerNorm([d_z//2]) normalizes the trailing axis -> C must equal d_z//2"
    N = B2 * D * C

    w = weight[:S, :S]
    if mask is not None:
        assert mask.shape[0] in (1, S) and mask.shape[1] == S and mask.shape[2] == 1
        w = w * mask[:, :, 0].astype(w.dtype)        # cheap SxS host-side fold
    w = w.astype(mxu_dtype)                           # bf16-resident MXU operand
    b2d = bias[:S].astype(jnp.float32).reshape(S, 1)

    # Free contiguous flatten: [S, d_z, D, C] -> [S, d_z*D*C].
    # z1 = lanes [0, N), z2 = lanes [N, 2N) of every row.
    zf = z.reshape(S, 2 * N)

    vmem_budget, min_steps = _tpu_defaults()
    w_bytes = S * S * w.dtype.itemsize
    n_blk = lane_block or _choose_lane_block(
        N, C, S, z.dtype.itemsize, z.dtype.itemsize, w_bytes, vmem_budget, min_steps)
    assert N % n_blk == 0 and n_blk % C == 0 and n_blk % 128 == 0
    nb = N // n_blk
    vmem_est = _estimate_vmem_bytes(n_blk, S, z.dtype.itemsize, z.dtype.itemsize, w_bytes)
    vmem_limit = int(max(32 << 20, min(int(vmem_est * 1.5), 96 << 20)))

    out = pl.pallas_call(
        functools.partial(_sgu_kernel, seg=C, mxu_dtype=mxu_dtype),
        out_shape=jax.ShapeDtypeStruct((S, N), z.dtype),
        grid_spec=pltpu.PrefetchScalarGridSpec(
            num_scalar_prefetch=0,
            grid=(nb,),
            in_specs=[
                pl.BlockSpec((S, n_blk), lambda n: (0, n)),        # z1 half of zf
                pl.BlockSpec((S, n_blk), lambda n: (0, n + nb)),   # z2 half of zf
                pl.BlockSpec((S, S), lambda n: (0, 0)),            # W (resident)
                pl.BlockSpec((S, 1), lambda n: (0, 0)),            # bias column (resident)
            ],
            out_specs=pl.BlockSpec((S, n_blk), lambda n: (0, n)),  # lane-dense stores
        ),
        compiler_params=pltpu.CompilerParams(
            dimension_semantics=("parallel",),
            vmem_limit_bytes=vmem_limit,
        ),
    )(zf, zf, w, b2d)

    # Free reshape back to the module's [S, d_z//2, D, C] layout.
    return out.reshape(S, B2, D, C)


# ----------------------------------------------------------------------------
# Pure-JAX reference mirroring the PyTorch forward (f32).
# ----------------------------------------------------------------------------
def sgu_reference(z, weight, bias, mask=None):
    S = z.shape[0]
    z1, z2 = jnp.split(z.astype(jnp.float32), 2, axis=1)
    mean = jnp.mean(z2, axis=-1, keepdims=True)
    var = jnp.mean(jnp.square(z2 - mean), axis=-1, keepdims=True)
    z2n = (z2 - mean) / jnp.sqrt(var + LN_EPS)
    w = weight[:S, :S].astype(jnp.float32)
    if mask is not None:
        w = w * mask[:, :, 0].astype(jnp.float32)
    y = jnp.einsum("ij,jbdc->ibdc", w, z2n) + bias[:S][:, None, None, None]
    return (z1 * y).astype(z.dtype)


if __name__ == "__main__":
    key = jax.random.PRNGKey(0)
    S, d_z, D = 8, 8, 32      # seq_len=8, d_z=8 (d_z//2 = 4), spatial D=32
    C = d_z // 2              # trailing axis must equal d_z//2 (LayerNorm constraint)
    kz, kw = jax.random.split(key)

    z = jax.random.normal(kz, (S, d_z, D, C), dtype=jnp.float32)
    # deterministic parameter init matching the module's __init__
    weight = jax.random.uniform(kw, (S, S), minval=-0.01, maxval=0.01, dtype=jnp.float32)
    bias = jnp.ones((S,), dtype=jnp.float32)
    mask = jnp.tril(jnp.ones((S, S), dtype=bool))[:, :, None]   # causal visibility mask

    fwd = jax.jit(spatial_gating_unit)

    # Tolerances reflect bf16 MXU operands with f32 accumulation (per perf review);
    # everything else (LayerNorm, bias, gate) is exact f32.
    out = jax.block_until_ready(fwd(z, weight, bias))
    ref = sgu_reference(z, weight, bias)
    assert out.shape == (S, d_z // 2, D, C)
    np.testing.assert_allclose(np.asarray(out), np.asarray(ref), rtol=2e-2, atol=5e-3)

    out_m = jax.block_until_ready(fwd(z, weight, bias, mask))
    ref_m = sgu_reference(z, weight, bias, mask)
    np.testing.assert_allclose(np.asarray(out_m), np.asarray(ref_m), rtol=2e-2, atol=5e-3)

    print("KERNEL_OK")
</pallas_src>

<mosaic_0001>
module attributes {stable_mosaic.version = 11 : i64} {
  func.func @_sgu_kernel(%arg0: i32, %arg1: memref<8x128xf32, #tpu.memory_space<vmem>>, %arg2: memref<8x128xf32, #tpu.memory_space<vmem>>, %arg3: memref<8x8xbf16, #tpu.memory_space<vmem>>, %arg4: memref<8x1xf32, #tpu.memory_space<vmem>>, %arg5: memref<8x128xf32, #tpu.memory_space<vmem>>) attributes {dimension_semantics = [#tpu.dimension_semantics<parallel>], iteration_bounds = array<i64: 4>, scalar_prefetch = 0 : i64, scratch_operands = 0 : i64, tpu.core_type = #tpu.core_type<tc>, window_params = [{transform_indices = @transform_0, window_bounds = array<i64: 8, 128>}, {transform_indices = @transform_1, window_bounds = array<i64: 8, 128>}, {pipeline_mode = #tpu.pipeline_mode<synchronous>, transform_indices = @transform_2, window_bounds = array<i64: 8, 8>}, {pipeline_mode = #tpu.pipeline_mode<synchronous>, transform_indices = @transform_3, window_bounds = array<i64: 8, 1>}, {transform_indices = @transform_4, window_bounds = array<i64: 8, 128>}]} {
    %c0 = arith.constant 0 : index
    %c0_0 = arith.constant 0 : index
    %0 = vector.load %arg2[%c0, %c0_0] : memref<8x128xf32, #tpu.memory_space<vmem>>, vector<8x128xf32>
    %1 = tpu.iota {dimensions = array<i32: 1>} : vector<8x128xi32>
    %c3_i32 = arith.constant 3 : i32
    %2 = vector.broadcast %c3_i32 : i32 to vector<8x128xi32>
    %3 = arith.andi %1, %2 : vector<8x128xi32>
    %c3_i32_1 = arith.constant 3 : i32
    %4 = vector.broadcast %c3_i32_1 : i32 to vector<8x128xi32>
    %5 = arith.cmpi slt, %3, %4 : vector<8x128xi32>
    %c127_i32 = arith.constant 127 : i32
    %6 = tpu.dynamic_rotate %0 by %c127_i32 dim 1 : vector<8x128xf32>, i32 -> vector<8x128xf32>
    %c3_i32_2 = arith.constant 3 : i32
    %7 = tpu.dynamic_rotate %0 by %c3_i32_2 dim 1 : vector<8x128xf32>, i32 -> vector<8x128xf32>
    %8 = arith.select %5, %6, %7 : vector<8x128xi1>, vector<8x128xf32>
    %9 = arith.addf %0, %8 : vector<8x128xf32>
    %c2_i32 = arith.constant 2 : i32
    %10 = vector.broadcast %c2_i32 : i32 to vector<8x128xi32>
    %11 = arith.cmpi slt, %3, %10 : vector<8x128xi32>
    %c126_i32 = arith.constant 126 : i32
    %12 = tpu.dynamic_rotate %9 by %c126_i32 dim 1 : vector<8x128xf32>, i32 -> vector<8x128xf32>
    %c2_i32_3 = arith.constant 2 : i32
    %13 = tpu.dynamic_rotate %9 by %c2_i32_3 dim 1 : vector<8x128xf32>, i32 -> vector<8x128xf32>
    %14 = arith.select %11, %12, %13 : vector<8x128xi1>, vector<8x128xf32>
    %15 = arith.addf %9, %14 : vector<8x128xf32>
    %cst = arith.constant 2.500000e-01 : f32
    %16 = vector.broadcast %cst : f32 to vector<8x128xf32>
    %17 = arith.mulf %15, %16 : vector<8x128xf32>
    %18 = arith.subf %0, %17 : vector<8x128xf32>
    %19 = arith.mulf %18, %18 : vector<8x128xf32>
    %c127_i32_4 = arith.constant 127 : i32
    %20 = tpu.dynamic_rotate %19 by %c127_i32_4 dim 1 : vector<8x128xf32>, i32 -> vector<8x128xf32>
    %c3_i32_5 = arith.constant 3 : i32
    %21 = tpu.dynamic_rotate %19 by %c3_i32_5 dim 1 : vector<8x128xf32>, i32 -> vector<8x128xf32>
    %22 = arith.select %5, %20, %21 : vector<8x128xi1>, vector<8x128xf32>
    %23 = arith.addf %19, %22 : vector<8x128xf32>
    %c126_i32_6 = arith.constant 126 : i32
    %24 = tpu.dynamic_rotate %23 by %c126_i32_6 dim 1 : vector<8x128xf32>, i32 -> vector<8x128xf32>
    %c2_i32_7 = arith.constant 2 : i32
    %25 = tpu.dynamic_rotate %23 by %c2_i32_7 dim 1 : vector<8x128xf32>, i32 -> vector<8x128xf32>
    %26 = arith.select %11, %24, %25 : vector<8x128xi1>, vector<8x128xf32>
    %27 = arith.addf %23, %26 : vector<8x128xf32>
    %cst_8 = arith.constant 2.500000e-01 : f32
    %28 = vector.broadcast %cst_8 : f32 to vector<8x128xf32>
    %29 = arith.mulf %27, %28 : vector<8x128xf32>
    %cst_9 = arith.constant 9.99999974E-6 : f32
    %30 = vector.broadcast %cst_9 : f32 to vector<8x128xf32>
    %31 = arith.addf %29, %30 : vector<8x128xf32>
    %32 = math.rsqrt %31 : vector<8x128xf32>
    %33 = arith.mulf %18, %32 : vector<8x128xf32>
    %c0_10 = arith.constant 0 : index
    %c0_11 = arith.constant 0 : index
    %34 = vector.load %arg3[%c0_10, %c0_11] : memref<8x8xbf16, #tpu.memory_space<vmem>>, vector<8x8xbf16>
    %35 = arith.truncf %33 : vector<8x128xf32> to vector<8x128xbf16>
    %cst_12 = arith.constant dense<0.000000e+00> : vector<8x128xf32>
    %36 = tpu.matmul %34, %35, %cst_12 {dimension_numbers = #tpu.dot_dimension_numbers<[1], [0], [0], [1], [0, 0, 1, 1], [], []>} : vector<8x8xbf16>, vector<8x128xbf16>, vector<8x128xf32> -> vector<8x128xf32>
    %c0_13 = arith.constant 0 : index
    %c0_14 = arith.constant 0 : index
    %37 = vector.load %arg4[%c0_13, %c0_14] : memref<8x1xf32, #tpu.memory_space<vmem>>, vector<8x1xf32>
    %38 = vector.broadcast %37 : vector<8x1xf32> to vector<8x128xf32>
    %39 = arith.addf %36, %38 : vector<8x128xf32>
    %c0_15 = arith.constant 0 : index
    %c0_16 = arith.constant 0 : index
    %40 = vector.load %arg1[%c0_15, %c0_16] : memref<8x128xf32, #tpu.memory_space<vmem>>, vector<8x128xf32>
    %41 = arith.mulf %40, %39 : vector<8x128xf32>
    %c0_17 = arith.constant 0 : index
    %c0_18 = arith.constant 0 : index
    %42 = vector.load %arg5[%c0_17, %c0_18] : memref<8x128xf32, #tpu.memory_space<vmem>>, vector<8x128xf32>
    tpu.vector_store %arg5[%c0_17, %c0_18], %41 {strides = array<i32>} : memref<8x128xf32, #tpu.memory_space<vmem>>, vector<8x128xf32>,
    return
  }
  func.func @transform_0(%arg0: i32) -> (i32, i32) {
    %c0_i32 = arith.constant 0 : i32
    %c0_i32_0 = arith.constant 0 : i32
    return %c0_i32, %arg0 : i32, i32
  }
  func.func @transform_1(%arg0: i32) -> (i32, i32) {
    %c4_i32 = arith.constant 4 : i32
    %0 = arith.addi %arg0, %c4_i32 : i32
    %c0_i32 = arith.constant 0 : i32
    %c0_i32_0 = arith.constant 0 : i32
    return %c0_i32, %0 : i32, i32
  }
  func.func @transform_2(%arg0: i32) -> (i32, i32) {
    %c0_i32 = arith.constant 0 : i32
    %c0_i32_0 = arith.constant 0 : i32
    %c0_i32_1 = arith.constant 0 : i32
    return %c0_i32, %c0_i32_0 : i32, i32
  }
  func.func @transform_3(%arg0: i32) -> (i32, i32) {
    %c0_i32 = arith.constant 0 : i32
    %c0_i32_0 = arith.constant 0 : i32
    %c0_i32_1 = arith.constant 0 : i32
    return %c0_i32, %c0_i32_0 : i32, i32
  }
  func.func @transform_4(%arg0: i32) -> (i32, i32) {
    %c0_i32 = arith.constant 0 : i32
    %c0_i32_0 = arith.constant 0 : i32
    return %c0_i32, %arg0 : i32, i32
  }
}

</mosaic_0001>

<bundles_post_ra>
// kernel: spatial_gating_unit.1
= control target key start
LH: loop header
LB: loop body
LE: loop exit
PB: predicated region body
PF: predicated region fallthrough
CT: control target
= control target key end

     0   :  { %s456_s15 = smov 0   ;;  %s505_s0 = inlined_call_operand.vmem [shape: f32[8,1024], index: 0, kind: input, shape index: {}, may-alias: {0,1}]   ;;  %s506_s1 = inlined_call_operand.vmem [shape: f32[8,1024], index: 1, kind: input, shape index: {}, may-alias: {0,1}]   ;;  %s507_s2 = inlined_call_operand.vmem [shape: bf16[8,8], index: 2, kind: input, shape index: {}]   ;;  %s508_s3 = inlined_call_operand.vmem [shape: f32[8,1], index: 3, kind: input, shape index: {}]   ;;  %s509_s4 = inlined_call_operand.vmem [shape: f32[8,512], index: 4, kind: output, shape index: {}]  }
   0x1 LB: > { %s462_s16 = sadd.s32 4294967295, %s422_s15   ;;  %p383_p0 = scmp.ge.s32.totalorder %s422_s15, 1  ;;  %s422_s15 = sphi %s456_s15, %s14_s15  }
   0x2   : > { %p174_p1 = scmp.lt.s32.totalorder %s422_s15, 5 }
   0x4   : > { %p175_p2 = pnand %p383_p0, %p174_p1 }
   0x5   : > { %s207_s17 = sadd.s32 (!%p175_p2), 4, %s462_s16  ;;  %s424_s22 = smov (!%p175_p2), 127   ;;  %v219_v1 = vlaneseq (!%p175_p2)  ;;  %v428_v17 = vmov (!%p175_p2), 0.0   ;;  %vm429_vm2 = vmmov (!%p175_p2), 0   ;;  %v257_v22 = vld [vmem:[%s508_s3] sm:$0xff] (!%p175_p2)  ;;  %v430_v23 = vmov (!%p175_p2), 0  }
   0x6   : > { %178 = sbr.rel (%p175_p2) target bundleno = 743 (0x2e7), region = 36  ;;  %p208_p3 = scmp.lt.s32.totalorder (!%p175_p2), %s207_s17, 7  ;;  %392 = vmatprep.subr.bf16.mxu0 (!%p175_p2), %v428_v17  ;;  %394 = vmatprep.mubr.msk.bf16.mxu0 (!%p175_p2), %vm429_vm2, %v428_v17  ;;  %vm267_vm3 = vcmask (!%p175_p2), 1043456   ;;  %v255_v34 = vld [vmem:[%s507_s2] sm:$0xf] (!%p175_p2)  ;;  %vm263_vm4 = vcmask (!%p175_p2), 64512  }
   0x7   : > { %s425_s23 = smov (!%p175_p2), 3   ;;  %v220_v2 = vand.u32 (!%p175_p2), 127, %v219_v1  ;;  %s426_s24 = smov (!%p175_p2), 126   ;;  %413 = vset.pattern.permute.xlu0 (!%p175_p2), %v430_v23 }
   0x8   : > { %s427_s25 = smov (!%p175_p2), 2   ;;  %p203_p4 = scmp.lt.s32.totalorder (!%p175_p2), %s462_s16, 7 }
   0x9   : > { %v221_v3 = vand.u32 (!%p175_p2), 3, %v220_v2  ;;  %p213_p5 = scmp.lt.s32.totalorder (!%p175_p2), %s462_s16, 3 }
   0xb   : > { %vm470_vm0 = vcmp.lt.s32.totalorder (!%p175_p2), %v221_v3, 3  ;;  %vm476_vm1 = vcmp.lt.s32.totalorder (!%p175_p2), %v221_v3, 2 }
   0xd   : > { %s515_s17 = smov (!%p208_p3, %s207_s17), 7 }
   0xe   : > { %s385_s18 = sshll.u32 %s515_s17, 3 }
   0xf   : > { %s211_s21 = scalar_lea.vmem %s506_s1, %s385_s18 }
  0x10   : > { %v218_v0 = vld [vmem:[%s211_s21] sm:$0xff]  ;;  %s204_s30 = scalar_select %p203_p4, %s462_s16, 7 }
  0x11   : > { %223 = vrot.lane.b32.xlu0 %v218_v0, %s424_s22  ;;  %s517_s16 = smov (!%p213_p5, %s462_s16), 3 }
  0x12   : > { %s384_s5 = sshll.u32 %s204_s30, 3  ;;  %s386_s9 = sshll.u32 %s517_s16, 3 }
  0x13   : > { %s206_s8 = scalar_lea.vmem %s505_s0, %s384_s5  ;;  %s216_s12 = scalar_lea.vmem %s509_s4, %s386_s9 }
  0x14   : > { %v311_v37 = vld [vmem:[%s206_s8] sm:$0xff] }
  0x15   : > { %225 = vrot.lane.b32.xlu0 %v218_v0, %s425_s23 }
  0x83   : > { %v224_v4 = vpop.permute.xlu0 %223 }
  0x87   : > { %v226_v6 = vpop.permute.xlu0 %225 }
  0x88   : > { %v227_v7 = vsel %vm470_vm0, %v224_v4, %v226_v6 }
  0x89   : > { %v228_v8 = vadd.f32 %v227_v7, %v218_v0 }
  0x8b   : > { %230 = vrot.lane.b32.xlu1 %v228_v8, %s426_s24 }
  0x8f   : > { %232 = vrot.lane.b32.xlu1 %v228_v8, %s427_s25 }
  0xfd   : > { %v231_v9 = vpop.permute.xlu1 %230 }
 0x101   : > { %v233_v11 = vpop.permute.xlu1 %232 }
 0x102   : > { %v234_v12 = vsel %vm476_vm1, %v231_v9, %v233_v11 }
 0x103   : > { %v235_v13 = vadd.f32 %v234_v12, %v228_v8 }
 0x105   : > { %v236_v14 = vmul.f32 0.25, %v235_v13 }
 0x107   : > { %v237_v15 = vsub.f32 %v218_v0, %v236_v14 }
 0x109   : > { %v238_v16 = vmul.f32 %v237_v15, %v237_v15 }
 0x10b   : > { %241 = vrot.lane.b32.xlu1 %v238_v16, %s425_s23  ;;  %239 = vrot.lane.b32.xlu0 %v238_v16, %s424_s22 }
 0x17d   : > { %v242_v18 = vpop.permute.xlu1 %241  ;;  %v240_v19 = vpop.permute.xlu0 %239 }
 0x17e   : > { %v243_v20 = vsel %vm470_vm0, %v240_v19, %v242_v18 }
 0x17f   : > { %v244_v21 = vadd.f32 %v243_v20, %v238_v16 }
 0x181   : > { %247 = vrot.lane.b32.xlu1 %v244_v21, %s427_s25  ;;  %245 = vrot.lane.b32.xlu0 %v244_v21, %s426_s24 }
 0x185   : > { %260 = vperm.xlu0 %413, %v257_v22  }
 0x1f3   : > { %v248_v24 = vpop.permute.xlu1 %247  ;;  %v246_v25 = vpop.permute.xlu0 %245 }
 0x1f4   : > { %v249_v26 = vsel %vm476_vm1, %v246_v25, %v248_v24 }
 0x1f5   : > { %v250_v27 = vadd.f32 %v249_v26, %v244_v21 }
 0x1f7   : > { %v251_v28 = vmul.f32 0.25, %v250_v27 }
 0x1f9   : > { %v252_v29 = vadd.f32 1e-05, %v251_v28 }
 0x1fb   : > { %414 = vrsqrt.f32 %v252_v29 }
 0x204   : > { %v261_v35 = vpop.permute.xlu0 %260 }
 0x205   : > { %v415_v30 = vpop.eup %414 }
 0x206   : > { %v254_v31 = vmul.f32 %v415_v30, %v237_v15 }
 0x208   : > { %v256_v32 = vpack.c.bf16 %v254_v31, %v254_v31 }
 0x20a   : > { %v269_v33 = vsel %vm267_vm3, %v256_v32, 0 }
 0x20b   : > { %393 = vmatpush3.bf16.msra.mxu0 %v269_v33 }
 0x20e   : > { %395 = vmatmul.mubr.msk.bf16.vlgmr.msra.gmra.mrb[0].mxu0 %vm263_vm4, %v255_v34 }
 0x2e1   : > { %v305_v36 = vpop.f32.mrb[0].mxu0 }
 0x2e2   : > { %v306_v38 = vadd.f32 %v305_v36, %v261_v35  ;;  %v396_v39 = vpop.f32.mrb[1].mxu0 }
 0x2e3   : > { %v308_v40 = vpop.f32.mrb[2].mxu0 }
 0x2e4   : > { %v312_v41 = vmul.f32 %v311_v37, %v306_v38  ;;  %v397_v42 = vpop.f32.mrb[3].mxu0 }
 0x2e6   : > { %313 = vst [vmem:[%s216_s12] sm:$0xff] %v312_v41 }
 0x2e7 PF: > { %s14_s15 = sadd.s32 1, %s422_s15  }
 0x2e8   : > { %p11_p6 = scmp.ge.s32.totalorder %s14_s15, 6  }
 0x2ea   :  { %13 = sbr.rel (!%p11_p6) target bundleno = 1 (0x1), region = 69 }

</bundles_post_ra>
